<compile_context>
chip_gen: v6e
topology: v6e:2x2x1
jax: 0.10.0
libtpu: 0.0.40
codegen_flags: <defaults>
</compile_context>

<pallas_src>
import math
import functools

import jax
import jax.numpy as jnp
from jax import lax
from jax.experimental import pallas as pl
from jax.experimental.pallas import tpu as pltpu


MXU_DTYPE = jnp.bfloat16      # matmul-operand dtype (f32 accumulation everywhere)
LANE = 128                    # TPU lane width: output vocab dim padded to this


def _round_up(x, m):
    return (x + m - 1) // m * m


def _vmem_limit_bytes():
    """Per-generation VMEM cap with headroom (v7x ~56 MiB, v5e/v6e ~112 MiB)."""
    cap = 64 * 1024 * 1024
    try:
        cap = int(pltpu.get_tpu_info().vmem_capacity_bytes)
    except Exception:
        pass
    return (cap * 7) // 8


def _pick_spt(B, L, H, n_heads, budget_bytes):
    """Largest sequences-per-batch-tile whose resident set fits the VMEM budget.

    Capped so there are >= 2 batch tiles, keeping both TensorCores busy on
    dual-TC parts (cost: one extra streaming pass over the layer weights,
    which single-TC parts would not need).
    """
    cap = max(1, (B + 1) // 2)
    best = 1
    for s in range(1, cap + 1):
        n = s * L
        est = (4 * s * L * H * 4              # emb-in + hidden-out blocks (double buffered)
               + 12 * H * H * 2 * 2           # per-layer bf16 matmul weights, double buffered
               + n * 12 * H * 4               # f32 activation intermediates (qkv/ffn/residual)
               + s * n_heads * L * L * 8)     # attention scores + probabilities (f32)
        if est <= budget_bytes:
            best = s
    return best


# --------------------------------------------------------------------------
# in-kernel helpers (all f32 elementwise math)
# --------------------------------------------------------------------------
def _layernorm(h, g, b, eps=1e-6):
    # BERT4Rec LayerNorm: g * (x - mean) / (std_unbiased + eps) + b   (exact div)
    n = h.shape[-1]
    mean = jnp.sum(h, axis=-1, keepdims=True) * (1.0 / n)
    d = h - mean
    var = jnp.sum(d * d, axis=-1, keepdims=True) * (1.0 / (n - 1))
    return g * (d / (jnp.sqrt(var) + eps)) + b


def _gelu(x):
    # BERT4Rec custom GELU (tanh approximation)
    return 0.5 * x * (1.0 + jnp.tanh(math.sqrt(2.0 / math.pi)
                                     * (x + 0.044715 * x * x * x)))


def _softmax_lastdim(scores):
    m = jnp.max(scores, axis=-1, keepdims=True)
    e = jnp.exp(scores - m)
    inv = pl.reciprocal(jnp.sum(e, axis=-1, keepdims=True), approx=True)   # EUP slot
    return e * inv


# --------------------------------------------------------------------------
# kernel 1: embedding add + all transformer blocks (grid = (batch_tiles, layers))
# --------------------------------------------------------------------------
def bert_layers_kernel(n_heads,
                       emb_ref, mask_ref,
                       ln1_g, ln1_b, wqkv, bqkv, wo, bo,
                       ln2_g, ln2_b, w1, b1, w2, b2,
                       h_ref):
    """One transformer block per grid step along the (innermost) layer axis.

    h_ref's index map ignores the layer axis, so its block stays resident in
    VMEM across the whole layer loop and doubles as the layer accumulator.
    """
    layer = pl.program_id(1)

    spt, L, H = h_ref.shape            # sequences per tile, seq len, hidden
    N = spt * L                        # flattened rows for dense matmuls
    d_k = H // n_heads

    # fused embedding add on the first layer step of each batch tile
    @pl.when(layer == 0)
    def _init():
        h_ref[...] = emb_ref[...]

    x = h_ref[...].reshape(N, H)       # (rows, H) f32

    # ---- multi-head self-attention sublayer: x + Attn(LN1(x)) ----
    h = _layernorm(x, ln1_g[...], ln1_b[...])
    # single fused QKV matmul; 1/sqrt(d_k) already folded into the Q columns
    qkv = jnp.dot(h.astype(MXU_DTYPE), wqkv[...],
                  preferred_element_type=jnp.float32) + bqkv[...]
    qkv3 = qkv.reshape(spt, L, 3 * H)

    # additive key mask (0 valid / -1e9 pad), broadcast ONCE outside the head loop
    am = jnp.broadcast_to(mask_ref[...], (spt, L, L))

    ctx_heads = []
    for hd in range(n_heads):          # static head loop (scores/ctx only)
        qs = slice(hd * d_k, (hd + 1) * d_k)
        ks = slice(H + hd * d_k, H + (hd + 1) * d_k)
        vs = slice(2 * H + hd * d_k, 2 * H + (hd + 1) * d_k)
        qh, kh, vh = qkv3[:, :, qs], qkv3[:, :, ks], qkv3[:, :, vs]  # (spt, L, d_k)
        scores = lax.dot_general(qh, kh, (((2,), (2,)), ((0,), (0,))),
                                 preferred_element_type=jnp.float32)
        p = _softmax_lastdim(scores + am)
        ctx_heads.append(
            lax.dot_general(p, vh, (((2,), (1,)), ((0,), (0,))),
                            preferred_element_type=jnp.float32))      # (spt, L, d_k)
    # concat(heads) then ONE full-depth (K = H) Wo matmul
    ctx = jnp.concatenate(ctx_heads, axis=-1).reshape(N, H)
    attn = jnp.dot(ctx.astype(MXU_DTYPE), wo[...],
                   preferred_element_type=jnp.float32) + bo[...]
    x = x + attn

    # ---- position-wise feed-forward sublayer: x + FFN(LN2(x)) ----
    h2 = _layernorm(x, ln2_g[...], ln2_b[...])
    ff = _gelu(jnp.dot(h2.astype(MXU_DTYPE), w1[...],
                       preferred_element_type=jnp.float32) + b1[...])
    x = x + jnp.dot(ff.astype(MXU_DTYPE), w2[...],
                    preferred_element_type=jnp.float32) + b2[...]

    h_ref[...] = x.reshape(spt, L, H)  # stays in VMEM for the next layer step


# --------------------------------------------------------------------------
# kernel 2: output head (tiled rows x vocab matmul, lane dense)
# --------------------------------------------------------------------------
def head_kernel(x_ref, w_ref, b_ref, o_ref):
    o_ref[...] = (jnp.dot(x_ref[...].astype(MXU_DTYPE), w_ref[...],
                          preferred_element_type=jnp.float32) + b_ref[...])


def _output_head(hidden, w_out, b_out, out_dim):
    Bp, L, H = hidden.shape
    Vp = w_out.shape[-1]                         # padded to a multiple of 128
    R = Bp * L
    x = hidden.reshape(R, H)

    tr = min(_round_up(R, 8), 256)
    Rp = _round_up(R, tr)
    if Rp != R:
        x = jnp.pad(x, ((0, Rp - R), (0, 0)))
    tv = 512 if Vp % 512 == 0 else (256 if Vp % 256 == 0 else 128)

    logits = pl.pallas_call(
        head_kernel,
        grid=(Rp // tr, Vp // tv),
        in_specs=[pl.BlockSpec((tr, H), lambda i, j: (i, 0)),
                  pl.BlockSpec((H, tv), lambda i, j: (0, j)),
                  pl.BlockSpec((1, tv), lambda i, j: (0, j))],
        out_specs=pl.BlockSpec((tr, tv), lambda i, j: (i, j)),
        out_shape=jax.ShapeDtypeStruct((Rp, Vp), jnp.float32),
        compiler_params=pltpu.CompilerParams(
            dimension_semantics=("parallel", "parallel"),
            vmem_limit_bytes=_vmem_limit_bytes()),
    )(x, w_out, b_out)

    return logits[:R, :out_dim].reshape(Bp, L, out_dim)


# --------------------------------------------------------------------------
# wrapper
# --------------------------------------------------------------------------
def bert_forward(tokens, params, n_heads):
    """Full BERT4Rec forward; returns (logits, hidden) like the PyTorch module."""
    B0, L = tokens.shape
    tok_tbl = params["tok"]
    H = tok_tbl.shape[-1]
    st = params["stack"]
    n_layers = st["wqkv"].shape[0]

    vmem_limit = _vmem_limit_bytes()
    spt = _pick_spt(B0, L, H, n_heads, (vmem_limit * 3) // 5)
    Bp = _round_up(B0, spt)
    if Bp != B0:
        tokens = jnp.pad(tokens, ((0, Bp - B0), (0, 0)))   # all-padding extra rows
    n_bt = Bp // spt

    # TODO(synk): the token-embedding row gather stays in plain XLA (a
    # data-dependent gather has no clean rectangular BlockSpec); the positional
    # add and everything downstream is fused into the Pallas kernels.
    emb = tok_tbl[tokens] + params["pos"][None, :, :]                 # (Bp, L, H) f32
    add_mask = jnp.where(tokens > 0, 0.0, -1e9).astype(jnp.float32)[:, None, :]

    weight_names = ("ln1_g", "ln1_b", "wqkv", "bqkv", "wo", "bo",
                    "ln2_g", "ln2_b", "w1", "b1", "w2", "b2")
    weights = [st[n] for n in weight_names]

    tile_map = lambda bt, l: (bt, 0, 0)     # per-batch-tile activation blocks
    layer_map = lambda bt, l: (l, 0, 0)     # stacked per-layer weights (layer dim squeezed)

    in_specs = [pl.BlockSpec((spt, L, H), tile_map),    # token + positional embedding
                pl.BlockSpec((spt, 1, L), tile_map)]    # additive key mask
    in_specs += [pl.BlockSpec((None,) + w.shape[1:], layer_map) for w in weights]

    # hidden output: index map ignores the layer axis -> VMEM-resident accumulator.
    # NOTE: the layer axis must remain the innermost (fastest) grid axis.
    out_spec = pl.BlockSpec((spt, L, H), tile_map)

    cost = pl.CostEstimate(
        flops=int(2 * Bp * L * n_layers * 12 * H * H + 4 * Bp * L * L * H * n_layers),
        transcendentals=int(Bp * L * n_layers * (n_heads * L + 4 * H)),
        bytes_accessed=int(n_bt * n_layers * 12 * H * H * 2 + 3 * Bp * L * H * 4))

    hidden = pl.pallas_call(
        functools.partial(bert_layers_kernel, n_heads),
        grid=(n_bt, n_layers),
        in_specs=in_specs,
        out_specs=out_spec,
        out_shape=jax.ShapeDtypeStruct((Bp, L, H), jnp.float32),
        compiler_params=pltpu.CompilerParams(
            dimension_semantics=("parallel", "arbitrary"),
            vmem_limit_bytes=vmem_limit),
        cost_estimate=cost,
    )(emb, add_mask, *weights)

    logits = _output_head(hidden, params["w_out"], params["b_out"], params["out_dim"])
    return logits[:B0], hidden[:B0]


# --------------------------------------------------------------------------
# parameter init (deterministic, synthetic) -- pre-stacked / pre-fused weights
# --------------------------------------------------------------------------
def init_params(key, *, vocab_size, hidden, n_layers, n_heads, max_len, out_dim):
    def lin(k, fan_in, fan_out):
        kw, kb = jax.random.split(k)
        w = jax.random.normal(kw, (fan_in, fan_out), jnp.float32) * 0.02
        b = jax.random.normal(kb, (1, fan_out), jnp.float32) * 0.02
        return w, b

    assert hidden % n_heads == 0
    scale = 1.0 / math.sqrt(hidden // n_heads)

    keys = jax.random.split(key, 3 + n_layers)
    tok = jax.random.normal(keys[0], (vocab_size, hidden), jnp.float32) * 0.02
    tok = tok.at[0].set(0.0)                       # padding_idx = 0
    pos = jax.random.normal(keys[1], (max_len, hidden), jnp.float32) * 0.02

    per_layer = []
    for i in range(n_layers):
        ks = jax.random.split(keys[2 + i], 6)
        wq, bq = lin(ks[0], hidden, hidden)
        wk, bk = lin(ks[1], hidden, hidden)
        wv, bv = lin(ks[2], hidden, hidden)
        wo, bo = lin(ks[3], hidden, hidden)
        w1, b1 = lin(ks[4], hidden, 4 * hidden)
        w2, b2 = lin(ks[5], 4 * hidden, hidden)
        # fuse QKV into one (H, 3H) weight; fold 1/sqrt(d_k) into the Q slice
        wqkv = jnp.concatenate([wq * scale, wk, wv], axis=1)
        bqkv = jnp.concatenate([bq * scale, bk, bv], axis=1)
        per_layer.append(dict(
            ln1_g=jnp.ones((1, hidden), jnp.float32),
            ln1_b=jnp.zeros((1, hidden), jnp.float32),
            wqkv=wqkv, bqkv=bqkv, wo=wo, bo=bo,
            ln2_g=jnp.ones((1, hidden), jnp.float32),
            ln2_b=jnp.zeros((1, hidden), jnp.float32),
            w1=w1, b1=b1, w2=w2, b2=b2))

    # stack per-layer weights along a leading layer axis; matmul weights in bf16
    matmul_weights = {"wqkv", "wo", "w1", "w2"}
    stack = {}
    for name in per_layer[0]:
        arr = jnp.stack([lp[name] for lp in per_layer], axis=0)
        if name in matmul_weights:
            arr = arr.astype(MXU_DTYPE)
        stack[name] = arr

    # output head: pad vocab dim to a lane-dense multiple of 128
    w_out, b_out = lin(keys[2 + n_layers], hidden, out_dim)
    v_pad = _round_up(out_dim, LANE)
    w_out = jnp.pad(w_out, ((0, 0), (0, v_pad - out_dim))).astype(MXU_DTYPE)
    b_out = jnp.pad(b_out, ((0, 0), (0, v_pad - out_dim)))

    return dict(tok=tok, pos=pos, stack=stack,
                w_out=w_out, b_out=b_out, out_dim=out_dim)


# --------------------------------------------------------------------------
if __name__ == "__main__":
    # small config consistent with the module's __init__
    bert_max_len = 8
    item_num = 20
    bert_num_blocks = 2
    bert_num_heads = 2
    bert_hidden_units = 32
    batch = 2

    vocab_size = item_num + 2          # 22
    out_dim = item_num + 1             # 21

    root = jax.random.PRNGKey(0)
    k_params, k_tokens = jax.random.split(root)
    params = init_params(k_params, vocab_size=vocab_size,
                         hidden=bert_hidden_units,
                         n_layers=bert_num_blocks,
                         n_heads=bert_num_heads,
                         max_len=bert_max_len,
                         out_dim=out_dim)

    tokens = jax.random.randint(k_tokens, (batch, bert_max_len), 0, vocab_size,
                                dtype=jnp.int32)   # zeros act as padding

    out, hidden = bert_forward(tokens, params, bert_num_heads)
    jax.block_until_ready((out, hidden))

    assert out.shape == (batch, bert_max_len, out_dim)
    assert hidden.shape == (batch, bert_max_len, bert_hidden_units)
    print("KERNEL_OK")
</pallas_src>

<mosaic_0001>
module attributes {stable_mosaic.version = 11 : i64} {
  func.func @bert_layers_kernel(%arg0: i32, %arg1: i32, %arg2: memref<1x8x32xf32, #tpu.memory_space<vmem>>, %arg3: memref<1x1x8xf32, #tpu.memory_space<vmem>>, %arg4: memref<1x1x32xf32, #tpu.memory_space<vmem>>, %arg5: memref<1x1x32xf32, #tpu.memory_space<vmem>>, %arg6: memref<1x32x96xbf16, #tpu.memory_space<vmem>>, %arg7: memref<1x1x96xf32, #tpu.memory_space<vmem>>, %arg8: memref<1x32x32xbf16, #tpu.memory_space<vmem>>, %arg9: memref<1x1x32xf32, #tpu.memory_space<vmem>>, %arg10: memref<1x1x32xf32, #tpu.memory_space<vmem>>, %arg11: memref<1x1x32xf32, #tpu.memory_space<vmem>>, %arg12: memref<1x32x128xbf16, #tpu.memory_space<vmem>>, %arg13: memref<1x1x128xf32, #tpu.memory_space<vmem>>, %arg14: memref<1x128x32xbf16, #tpu.memory_space<vmem>>, %arg15: memref<1x1x32xf32, #tpu.memory_space<vmem>>, %arg16: memref<1x8x32xf32, #tpu.memory_space<vmem>>) attributes {dimension_semantics = [#tpu.dimension_semantics<parallel>, #tpu.dimension_semantics<arbitrary>], iteration_bounds = array<i64: 2, 2>, scalar_prefetch = 0 : i64, scratch_operands = 0 : i64, tpu.core_type = #tpu.core_type<tc>, window_params = [{transform_indices = @transform_0, window_bounds = array<i64: 1, 8, 32>}, {transform_indices = @transform_1, window_bounds = array<i64: 1, 1, 8>}, {transform_indices = @transform_2, window_bounds = array<i64: 1, 1, 32>}, {transform_indices = @transform_3, window_bounds = array<i64: 1, 1, 32>}, {transform_indices = @transform_4, window_bounds = array<i64: 1, 32, 96>}, {transform_indices = @transform_5, window_bounds = array<i64: 1, 1, 96>}, {transform_indices = @transform_6, window_bounds = array<i64: 1, 32, 32>}, {transform_indices = @transform_7, window_bounds = array<i64: 1, 1, 32>}, {transform_indices = @transform_8, window_bounds = array<i64: 1, 1, 32>}, {transform_indices = @transform_9, window_bounds = array<i64: 1, 1, 32>}, {transform_indices = @transform_10, window_bounds = array<i64: 1, 32, 128>}, {transform_indices = @transform_11, window_bounds = array<i64: 1, 1, 128>}, {transform_indices = @transform_12, window_bounds = array<i64: 1, 128, 32>}, {transform_indices = @transform_13, window_bounds = array<i64: 1, 1, 32>}, {transform_indices = @transform_14, window_bounds = array<i64: 1, 8, 32>}]} {
    %c0_i32 = arith.constant 0 : i32
    %0 = arith.cmpi eq, %arg1, %c0_i32 : i32
    %1 = arith.extui %0 : i1 to i32
    %c0_i32_0 = arith.constant 0 : i32
    %2 = arith.cmpi ne, %1, %c0_i32_0 : i32
    scf.if %2 {
      %c0_70 = arith.constant 0 : index
      %c0_71 = arith.constant 0 : index
      %c0_72 = arith.constant 0 : index
      %140 = vector.load %arg2[%c0_70, %c0_71, %c0_72] : memref<1x8x32xf32, #tpu.memory_space<vmem>>, vector<1x8x32xf32>
      %c0_73 = arith.constant 0 : index
      %c0_74 = arith.constant 0 : index
      %c0_75 = arith.constant 0 : index
      %141 = vector.load %arg16[%c0_73, %c0_74, %c0_75] : memref<1x8x32xf32, #tpu.memory_space<vmem>>, vector<1x8x32xf32>
      tpu.vector_store %arg16[%c0_73, %c0_74, %c0_75], %140 {strides = array<i32>} : memref<1x8x32xf32, #tpu.memory_space<vmem>>, vector<1x8x32xf32>,
    } else {
    }
    %c0 = arith.constant 0 : index
    %c0_1 = arith.constant 0 : index
    %c0_2 = arith.constant 0 : index
    %3 = vector.load %arg16[%c0, %c0_1, %c0_2] : memref<1x8x32xf32, #tpu.memory_space<vmem>>, vector<1x8x32xf32>
    %4 = vector.shape_cast %3 : vector<1x8x32xf32> to vector<8x32xf32>
    %c0_3 = arith.constant 0 : index
    %c0_4 = arith.constant 0 : index
    %c0_5 = arith.constant 0 : index
    %5 = vector.load %arg4[%c0_3, %c0_4, %c0_5] : memref<1x1x32xf32, #tpu.memory_space<vmem>>, vector<1x1x32xf32>
    %6 = vector.shape_cast %5 : vector<1x1x32xf32> to vector<1x32xf32>
    %c0_6 = arith.constant 0 : index
    %c0_7 = arith.constant 0 : index
    %c0_8 = arith.constant 0 : index
    %7 = vector.load %arg5[%c0_6, %c0_7, %c0_8] : memref<1x1x32xf32, #tpu.memory_space<vmem>>, vector<1x1x32xf32>
    %8 = vector.shape_cast %7 : vector<1x1x32xf32> to vector<1x32xf32>
    %cst = arith.constant dense<0.000000e+00> : vector<8xf32>
    %9 = vector.multi_reduction <add>, %4, %cst [1] : vector<8x32xf32> to vector<8xf32>
    %10 = vector.shape_cast %9 : vector<8xf32> to vector<8x1xf32>
    %cst_9 = arith.constant 3.125000e-02 : f32
    %11 = vector.broadcast %cst_9 : f32 to vector<8x1xf32>
    %12 = arith.mulf %10, %11 : vector<8x1xf32>
    %13 = vector.broadcast %12 : vector<8x1xf32> to vector<8x32xf32>
    %14 = arith.subf %4, %13 : vector<8x32xf32>
    %15 = arith.mulf %14, %14 : vector<8x32xf32>
    %cst_10 = arith.constant dense<0.000000e+00> : vector<8xf32>
    %16 = vector.multi_reduction <add>, %15, %cst_10 [1] : vector<8x32xf32> to vector<8xf32>
    %17 = vector.shape_cast %16 : vector<8xf32> to vector<8x1xf32>
    %cst_11 = arith.constant 0.0322580636 : f32
    %18 = vector.broadcast %cst_11 : f32 to vector<8x1xf32>
    %19 = arith.mulf %17, %18 : vector<8x1xf32>
    %20 = math.sqrt %19 : vector<8x1xf32>
    %cst_12 = arith.constant 9.99999997E-7 : f32
    %21 = vector.broadcast %cst_12 : f32 to vector<8x1xf32>
    %22 = arith.addf %20, %21 : vector<8x1xf32>
    %23 = vector.broadcast %22 : vector<8x1xf32> to vector<8x32xf32>
    %24 = arith.divf %14, %23 : vector<8x32xf32>
    %25 = vector.broadcast %6 : vector<1x32xf32> to vector<8x32xf32>
    %26 = arith.mulf %25, %24 : vector<8x32xf32>
    %27 = vector.broadcast %8 : vector<1x32xf32> to vector<8x32xf32>
    %28 = arith.addf %26, %27 : vector<8x32xf32>
    %29 = arith.truncf %28 : vector<8x32xf32> to vector<8x32xbf16>
    %c0_13 = arith.constant 0 : index
    %c0_14 = arith.constant 0 : index
    %c0_15 = arith.constant 0 : index
    %30 = vector.load %arg6[%c0_13, %c0_14, %c0_15] : memref<1x32x96xbf16, #tpu.memory_space<vmem>>, vector<1x32x96xbf16>
    %31 = vector.shape_cast %30 : vector<1x32x96xbf16> to vector<32x96xbf16>
    %cst_16 = arith.constant dense<0.000000e+00> : vector<8x96xf32>
    %32 = tpu.matmul %29, %31, %cst_16 {dimension_numbers = #tpu.dot_dimension_numbers<[1], [0], [0], [1], [0, 0, 1, 1], [], []>} : vector<8x32xbf16>, vector<32x96xbf16>, vector<8x96xf32> -> vector<8x96xf32>
    %c0_17 = arith.constant 0 : index
    %c0_18 = arith.constant 0 : index
    %c0_19 = arith.constant 0 : index
    %33 = vector.load %arg7[%c0_17, %c0_18, %c0_19] : memref<1x1x96xf32, #tpu.memory_space<vmem>>, vector<1x1x96xf32>
    %34 = vector.shape_cast %33 : vector<1x1x96xf32> to vector<1x96xf32>
    %35 = vector.broadcast %34 : vector<1x96xf32> to vector<8x96xf32>
    %36 = arith.addf %32, %35 : vector<8x96xf32>
    %37 = vector.shape_cast %36 : vector<8x96xf32> to vector<1x8x96xf32>
    %c0_20 = arith.constant 0 : index
    %c0_21 = arith.constant 0 : index
    %c0_22 = arith.constant 0 : index
    %38 = vector.load %arg3[%c0_20, %c0_21, %c0_22] : memref<1x1x8xf32, #tpu.memory_space<vmem>>, vector<1x1x8xf32>
    %39 = vector.shape_cast %38 : vector<1x1x8xf32> to vector<1x1x8xf32>
    %40 = vector.broadcast %39 : vector<1x1x8xf32> to vector<1x8x8xf32>
    %41 = vector.extract_strided_slice %37 {offsets = [0, 0, 0], sizes = [1, 8, 16], strides = [1, 1, 1]} : vector<1x8x96xf32> to vector<1x8x16xf32>
    %42 = vector.extract_strided_slice %37 {offsets = [0, 0, 32], sizes = [1, 8, 16], strides = [1, 1, 1]} : vector<1x8x96xf32> to vector<1x8x16xf32>
    %43 = vector.extract_strided_slice %37 {offsets = [0, 0, 64], sizes = [1, 8, 16], strides = [1, 1, 1]} : vector<1x8x96xf32> to vector<1x8x16xf32>
    %cst_23 = arith.constant dense<0.000000e+00> : vector<1x8x8xf32>
    %44 = tpu.matmul %41, %42, %cst_23 {dimension_numbers = #tpu.dot_dimension_numbers<[2], [2], [1], [1], [0, 0, 0, 1, 1, 1], [0], [0]>} : vector<1x8x16xf32>, vector<1x8x16xf32>, vector<1x8x8xf32> -> vector<1x8x8xf32>
    %45 = arith.addf %44, %40 : vector<1x8x8xf32>
    %cst_24 = arith.constant dense<0xFF800000> : vector<1x8xf32>
    %46 = vector.multi_reduction <maximumf>, %45, %cst_24 [2] : vector<1x8x8xf32> to vector<1x8xf32>
    %47 = vector.shape_cast %46 : vector<1x8xf32> to vector<1x8x1xf32>
    %48 = vector.broadcast %47 : vector<1x8x1xf32> to vector<1x8x8xf32>
    %49 = arith.subf %45, %48 : vector<1x8x8xf32>
    %50 = math.exp %49 : vector<1x8x8xf32>
    %cst_25 = arith.constant dense<0.000000e+00> : vector<1x8xf32>
    %51 = vector.multi_reduction <add>, %50, %cst_25 [2] : vector<1x8x8xf32> to vector<1x8xf32>
    %52 = vector.shape_cast %51 : vector<1x8xf32> to vector<1x8x1xf32>
    %53 = tpu.reciprocal %52 {approx = true} : vector<1x8x1xf32> -> vector<1x8x1xf32>
    %54 = vector.broadcast %53 : vector<1x8x1xf32> to vector<1x8x8xf32>
    %55 = arith.mulf %50, %54 : vector<1x8x8xf32>
    %cst_26 = arith.constant dense<0.000000e+00> : vector<1x8x16xf32>
    %56 = tpu.matmul %55, %43, %cst_26 {dimension_numbers = #tpu.dot_dimension_numbers<[2], [1], [1], [2], [0, 0, 0, 1, 1, 2], [0], [0]>} : vector<1x8x8xf32>, vector<1x8x16xf32>, vector<1x8x16xf32> -> vector<1x8x16xf32>
    %57 = vector.extract_strided_slice %37 {offsets = [0, 0, 16], sizes = [1, 8, 16], strides = [1, 1, 1]} : vector<1x8x96xf32> to vector<1x8x16xf32>
    %58 = vector.extract_strided_slice %37 {offsets = [0, 0, 48], sizes = [1, 8, 16], strides = [1, 1, 1]} : vector<1x8x96xf32> to vector<1x8x16xf32>
    %59 = vector.extract_strided_slice %37 {offsets = [0, 0, 80], sizes = [1, 8, 16], strides = [1, 1, 1]} : vector<1x8x96xf32> to vector<1x8x16xf32>
    %cst_27 = arith.constant dense<0.000000e+00> : vector<1x8x8xf32>
    %60 = tpu.matmul %57, %58, %cst_27 {dimension_numbers = #tpu.dot_dimension_numbers<[2], [2], [1], [1], [0, 0, 0, 1, 1, 1], [0], [0]>} : vector<1x8x16xf32>, vector<1x8x16xf32>, vector<1x8x8xf32> -> vector<1x8x8xf32>
    %61 = arith.addf %60, %40 : vector<1x8x8xf32>
    %cst_28 = arith.constant dense<0xFF800000> : vector<1x8xf32>
    %62 = vector.multi_reduction <maximumf>, %61, %cst_28 [2] : vector<1x8x8xf32> to vector<1x8xf32>
    %63 = vector.shape_cast %62 : vector<1x8xf32> to vector<1x8x1xf32>
    %64 = vector.broadcast %63 : vector<1x8x1xf32> to vector<1x8x8xf32>
    %65 = arith.subf %61, %64 : vector<1x8x8xf32>
    %66 = math.exp %65 : vector<1x8x8xf32>
    %cst_29 = arith.constant dense<0.000000e+00> : vector<1x8xf32>
    %67 = vector.multi_reduction <add>, %66, %cst_29 [2] : vector<1x8x8xf32> to vector<1x8xf32>
    %68 = vector.shape_cast %67 : vector<1x8xf32> to vector<1x8x1xf32>
    %69 = tpu.reciprocal %68 {approx = true} : vector<1x8x1xf32> -> vector<1x8x1xf32>
    %70 = vector.broadcast %69 : vector<1x8x1xf32> to vector<1x8x8xf32>
    %71 = arith.mulf %66, %70 : vector<1x8x8xf32>
    %cst_30 = arith.constant dense<0.000000e+00> : vector<1x8x16xf32>
    %72 = tpu.matmul %71, %59, %cst_30 {dimension_numbers = #tpu.dot_dimension_numbers<[2], [1], [1], [2], [0, 0, 0, 1, 1, 2], [0], [0]>} : vector<1x8x8xf32>, vector<1x8x16xf32>, vector<1x8x16xf32> -> vector<1x8x16xf32>
    %73 = tpu.concatenate %56, %72 in 2 : vector<1x8x16xf32>, vector<1x8x16xf32> -> vector<1x8x32xf32>
    %74 = vector.shape_cast %73 : vector<1x8x32xf32> to vector<8x32xf32>
    %75 = arith.truncf %74 : vector<8x32xf32> to vector<8x32xbf16>
    %c0_31 = arith.constant 0 : index
    %c0_32 = arith.constant 0 : index
    %c0_33 = arith.constant 0 : index
    %76 = vector.load %arg8[%c0_31, %c0_32, %c0_33] : memref<1x32x32xbf16, #tpu.memory_space<vmem>>, vector<1x32x32xbf16>
    %77 = vector.shape_cast %76 : vector<1x32x32xbf16> to vector<32x32xbf16>
    %cst_34 = arith.constant dense<0.000000e+00> : vector<8x32xf32>
    %78 = tpu.matmul %75, %77, %cst_34 {dimension_numbers = #tpu.dot_dimension_numbers<[1], [0], [0], [1], [0, 0, 1, 1], [], []>} : vector<8x32xbf16>, vector<32x32xbf16>, vector<8x32xf32> -> vector<8x32xf32>
    %c0_35 = arith.constant 0 : index
    %c0_36 = arith.constant 0 : index
    %c0_37 = arith.constant 0 : index
    %79 = vector.load %arg9[%c0_35, %c0_36, %c0_37] : memref<1x1x32xf32, #tpu.memory_space<vmem>>, vector<1x1x32xf32>
    %80 = vector.shape_cast %79 : vector<1x1x32xf32> to vector<1x32xf32>
    %81 = vector.broadcast %80 : vector<1x32xf32> to vector<8x32xf32>
    %82 = arith.addf %78, %81 : vector<8x32xf32>
    %83 = arith.addf %4, %82 : vector<8x32xf32>
    %c0_38 = arith.constant 0 : index
    %c0_39 = arith.constant 0 : index
    %c0_40 = arith.constant 0 : index
    %84 = vector.load %arg10[%c0_38, %c0_39, %c0_40] : memref<1x1x32xf32, #tpu.memory_space<vmem>>, vector<1x1x32xf32>
    %85 = vector.shape_cast %84 : vector<1x1x32xf32> to vector<1x32xf32>
    %c0_41 = arith.constant 0 : index
    %c0_42 = arith.constant 0 : index
    %c0_43 = arith.constant 0 : index
    %86 = vector.load %arg11[%c0_41, %c0_42, %c0_43] : memref<1x1x32xf32, #tpu.memory_space<vmem>>, vector<1x1x32xf32>
    %87 = vector.shape_cast %86 : vector<1x1x32xf32> to vector<1x32xf32>
    %cst_44 = arith.constant dense<0.000000e+00> : vector<8xf32>
    %88 = vector.multi_reduction <add>, %83, %cst_44 [1] : vector<8x32xf32> to vector<8xf32>
    %89 = vector.shape_cast %88 : vector<8xf32> to vector<8x1xf32>
    %cst_45 = arith.constant 3.125000e-02 : f32
    %90 = vector.broadcast %cst_45 : f32 to vector<8x1xf32>
    %91 = arith.mulf %89, %90 : vector<8x1xf32>
    %92 = vector.broadcast %91 : vector<8x1xf32> to vector<8x32xf32>
    %93 = arith.subf %83, %92 : vector<8x32xf32>
    %94 = arith.mulf %93, %93 : vector<8x32xf32>
    %cst_46 = arith.constant dense<0.000000e+00> : vector<8xf32>
    %95 = vector.multi_reduction <add>, %94, %cst_46 [1] : vector<8x32xf32> to vector<8xf32>
    %96 = vector.shape_cast %95 : vector<8xf32> to vector<8x1xf32>
    %cst_47 = arith.constant 0.0322580636 : f32
    %97 = vector.broadcast %cst_47 : f32 to vector<8x1xf32>
    %98 = arith.mulf %96, %97 : vector<8x1xf32>
    %99 = math.sqrt %98 : vector<8x1xf32>
    %cst_48 = arith.constant 9.99999997E-7 : f32
    %100 = vector.broadcast %cst_48 : f32 to vector<8x1xf32>
    %101 = arith.addf %99, %100 : vector<8x1xf32>
    %102 = vector.broadcast %101 : vector<8x1xf32> to vector<8x32xf32>
    %103 = arith.divf %93, %102 : vector<8x32xf32>
    %104 = vector.broadcast %85 : vector<1x32xf32> to vector<8x32xf32>
    %105 = arith.mulf %104, %103 : vector<8x32xf32>
    %106 = vector.broadcast %87 : vector<1x32xf32> to vector<8x32xf32>
    %107 = arith.addf %105, %106 : vector<8x32xf32>
    %108 = arith.truncf %107 : vector<8x32xf32> to vector<8x32xbf16>
    %c0_49 = arith.constant 0 : index
    %c0_50 = arith.constant 0 : index
    %c0_51 = arith.constant 0 : index
    %109 = vector.load %arg12[%c0_49, %c0_50, %c0_51] : memref<1x32x128xbf16, #tpu.memory_space<vmem>>, vector<1x32x128xbf16>
    %110 = vector.shape_cast %109 : vector<1x32x128xbf16> to vector<32x128xbf16>
    %cst_52 = arith.constant dense<0.000000e+00> : vector<8x128xf32>
    %111 = tpu.matmul %108, %110, %cst_52 {dimension_numbers = #tpu.dot_dimension_numbers<[1], [0], [0], [1], [0, 0, 1, 1], [], []>} : vector<8x32xbf16>, vector<32x128xbf16>, vector<8x128xf32> -> vector<8x128xf32>
    %c0_53 = arith.constant 0 : index
    %c0_54 = arith.constant 0 : index
    %c0_55 = arith.constant 0 : index
    %112 = vector.load %arg13[%c0_53, %c0_54, %c0_55] : memref<1x1x128xf32, #tpu.memory_space<vmem>>, vector<1x1x128xf32>
    %113 = vector.shape_cast %112 : vector<1x1x128xf32> to vector<1x128xf32>
    %114 = vector.broadcast %113 : vector<1x128xf32> to vector<8x128xf32>
    %115 = arith.addf %111, %114 : vector<8x128xf32>
    %cst_56 = arith.constant 5.000000e-01 : f32
    %116 = vector.broadcast %cst_56 : f32 to vector<8x128xf32>
    %117 = arith.mulf %116, %115 : vector<8x128xf32>
    %cst_57 = arith.constant 4.471500e-02 : f32
    %118 = vector.broadcast %cst_57 : f32 to vector<8x128xf32>
    %119 = arith.mulf %118, %115 : vector<8x128xf32>
    %120 = arith.mulf %119, %115 : vector<8x128xf32>
    %121 = arith.mulf %120, %115 : vector<8x128xf32>
    %122 = arith.addf %115, %121 : vector<8x128xf32>
    %cst_58 = arith.constant 0.797884583 : f32
    %123 = vector.broadcast %cst_58 : f32 to vector<8x128xf32>
    %124 = arith.mulf %123, %122 : vector<8x128xf32>
    %125 = math.tanh %124 : vector<8x128xf32>
    %cst_59 = arith.constant 1.000000e+00 : f32
    %126 = vector.broadcast %cst_59 : f32 to vector<8x128xf32>
    %127 = arith.addf %126, %125 : vector<8x128xf32>
    %128 = arith.mulf %117, %127 : vector<8x128xf32>
    %129 = arith.truncf %128 : vector<8x128xf32> to vector<8x128xbf16>
    %c0_60 = arith.constant 0 : index
    %c0_61 = arith.constant 0 : index
    %c0_62 = arith.constant 0 : index
    %130 = vector.load %arg14[%c0_60, %c0_61, %c0_62] : memref<1x128x32xbf16, #tpu.memory_space<vmem>>, vector<1x128x32xbf16>
    %131 = vector.shape_cast %130 : vector<1x128x32xbf16> to vector<128x32xbf16>
    %cst_63 = arith.constant dense<0.000000e+00> : vector<8x32xf32>
    %132 = tpu.matmul %129, %131, %cst_63 {dimension_numbers = #tpu.dot_dimension_numbers<[1], [0], [0], [1], [0, 0, 1, 1], [], []>} : vector<8x128xbf16>, vector<128x32xbf16>, vector<8x32xf32> -> vector<8x32xf32>
    %133 = arith.addf %83, %132 : vector<8x32xf32>
    %c0_64 = arith.constant 0 : index
    %c0_65 = arith.constant 0 : index
    %c0_66 = arith.constant 0 : index
    %134 = vector.load %arg15[%c0_64, %c0_65, %c0_66] : memref<1x1x32xf32, #tpu.memory_space<vmem>>, vector<1x1x32xf32>
    %135 = vector.shape_cast %134 : vector<1x1x32xf32> to vector<1x32xf32>
    %136 = vector.broadcast %135 : vector<1x32xf32> to vector<8x32xf32>
    %137 = arith.addf %133, %136 : vector<8x32xf32>
    %138 = vector.shape_cast %137 : vector<8x32xf32> to vector<1x8x32xf32>
    %c0_67 = arith.constant 0 : index
    %c0_68 = arith.constant 0 : index
    %c0_69 = arith.constant 0 : index
    %139 = vector.load %arg16[%c0_67, %c0_68, %c0_69] : memref<1x8x32xf32, #tpu.memory_space<vmem>>, vector<1x8x32xf32>
    tpu.vector_store %arg16[%c0_67, %c0_68, %c0_69], %138 {strides = array<i32>} : memref<1x8x32xf32, #tpu.memory_space<vmem>>, vector<1x8x32xf32>,
    return
  }
  func.func @transform_0(%arg0: i32, %arg1: i32) -> (i32, i32, i32) {
    %c0_i32 = arith.constant 0 : i32
    %c0_i32_0 = arith.constant 0 : i32
    %c0_i32_1 = arith.constant 0 : i32
    return %arg0, %c0_i32, %c0_i32_0 : i32, i32, i32
  }
  func.func @transform_1(%arg0: i32, %arg1: i32) -> (i32, i32, i32) {
    %c0_i32 = arith.constant 0 : i32
    %c0_i32_0 = arith.constant 0 : i32
    %c0_i32_1 = arith.constant 0 : i32
    return %arg0, %c0_i32, %c0_i32_0 : i32, i32, i32
  }
  func.func @transform_2(%arg0: i32, %arg1: i32) -> (i32, i32, i32) {
    %c0_i32 = arith.constant 0 : i32
    %c0_i32_0 = arith.constant 0 : i32
    %c0_i32_1 = arith.constant 0 : i32
    return %arg1, %c0_i32, %c0_i32_0 : i32, i32, i32
  }
  func.func @transform_3(%arg0: i32, %arg1: i32) -> (i32, i32, i32) {
    %c0_i32 = arith.constant 0 : i32
    %c0_i32_0 = arith.constant 0 : i32
    %c0_i32_1 = arith.constant 0 : i32
    return %arg1, %c0_i32, %c0_i32_0 : i32, i32, i32
  }
  func.func @transform_4(%arg0: i32, %arg1: i32) -> (i32, i32, i32) {
    %c0_i32 = arith.constant 0 : i32
    %c0_i32_0 = arith.constant 0 : i32
    %c0_i32_1 = arith.constant 0 : i32
    return %arg1, %c0_i32, %c0_i32_0 : i32, i32, i32
  }
  func.func @transform_5(%arg0: i32, %arg1: i32) -> (i32, i32, i32) {
    %c0_i32 = arith.constant 0 : i32
    %c0_i32_0 = arith.constant 0 : i32
    %c0_i32_1 = arith.constant 0 : i32
    return %arg1, %c0_i32, %c0_i32_0 : i32, i32, i32
  }
  func.func @transform_6(%arg0: i32, %arg1: i32) -> (i32, i32, i32) {
    %c0_i32 = arith.constant 0 : i32
    %c0_i32_0 = arith.constant 0 : i32
    %c0_i32_1 = arith.constant 0 : i32
    return %arg1, %c0_i32, %c0_i32_0 : i32, i32, i32
  }
  func.func @transform_7(%arg0: i32, %arg1: i32) -> (i32, i32, i32) {
    %c0_i32 = arith.constant 0 : i32
    %c0_i32_0 = arith.constant 0 : i32
    %c0_i32_1 = arith.constant 0 : i32
    return %arg1, %c0_i32, %c0_i32_0 : i32, i32, i32
  }
  func.func @transform_8(%arg0: i32, %arg1: i32) -> (i32, i32, i32) {
    %c0_i32 = arith.constant 0 : i32
    %c0_i32_0 = arith.constant 0 : i32
    %c0_i32_1 = arith.constant 0 : i32
    return %arg1, %c0_i32, %c0_i32_0 : i32, i32, i32
  }
  func.func @transform_9(%arg0: i32, %arg1: i32) -> (i32, i32, i32) {
    %c0_i32 = arith.constant 0 : i32
    %c0_i32_0 = arith.constant 0 : i32
    %c0_i32_1 = arith.constant 0 : i32
    return %arg1, %c0_i32, %c0_i32_0 : i32, i32, i32
  }
  func.func @transform_10(%arg0: i32, %arg1: i32) -> (i32, i32, i32) {
    %c0_i32 = arith.constant 0 : i32
    %c0_i32_0 = arith.constant 0 : i32
    %c0_i32_1 = arith.constant 0 : i32
    return %arg1, %c0_i32, %c0_i32_0 : i32, i32, i32
  }
  func.func @transform_11(%arg0: i32, %arg1: i32) -> (i32, i32, i32) {
    %c0_i32 = arith.constant 0 : i32
    %c0_i32_0 = arith.constant 0 : i32
    %c0_i32_1 = arith.constant 0 : i32
    return %arg1, %c0_i32, %c0_i32_0 : i32, i32, i32
  }
  func.func @transform_12(%arg0: i32, %arg1: i32) -> (i32, i32, i32) {
    %c0_i32 = arith.constant 0 : i32
    %c0_i32_0 = arith.constant 0 : i32
    %c0_i32_1 = arith.constant 0 : i32
    return %arg1, %c0_i32, %c0_i32_0 : i32, i32, i32
  }
  func.func @transform_13(%arg0: i32, %arg1: i32) -> (i32, i32, i32) {
    %c0_i32 = arith.constant 0 : i32
    %c0_i32_0 = arith.constant 0 : i32
    %c0_i32_1 = arith.constant 0 : i32
    return %arg1, %c0_i32, %c0_i32_0 : i32, i32, i32
  }
  func.func @transform_14(%arg0: i32, %arg1: i32) -> (i32, i32, i32) {
    %c0_i32 = arith.constant 0 : i32
    %c0_i32_0 = arith.constant 0 : i32
    %c0_i32_1 = arith.constant 0 : i32
    return %arg0, %c0_i32, %c0_i32_0 : i32, i32, i32
  }
}

</mosaic_0001>

<bundles_post_ra>
// kernel: tpu_custom_call.1
= control target key start
LH: loop header
LB: loop body
LE: loop exit
PB: predicated region body
PF: predicated region fallthrough
CT: control target
= control target key end

     0   :  { %s2409_s0 = inlined_call_operand.vmem [shape: f32[2,8,32], index: 0, kind: input, shape index: {}]   ;;  %s2410_s1 = inlined_call_operand.vmem [shape: f32[2,1,8], index: 1, kind: input, shape index: {}]   ;;  %s2411_s2 = inlined_call_operand.vmem [shape: f32[2,1,32], index: 2, kind: input, shape index: {}]   ;;  %s2412_s3 = inlined_call_operand.vmem [shape: f32[2,1,32], index: 3, kind: input, shape index: {}]   ;;  %s2413_s4 = inlined_call_operand.vmem [shape: bf16[2,32,96], index: 4, kind: input, shape index: {}]   ;;  %s2414_s5 = inlined_call_operand.vmem [shape: f32[2,1,96], index: 5, kind: input, shape index: {}]   ;;  %s2415_s6 = inlined_call_operand.vmem [shape: bf16[2,32,32], index: 6, kind: input, shape index: {}]   ;;  %s2416_s7 = inlined_call_operand.vmem [shape: f32[2,1,32], index: 7, kind: input, shape index: {}]   ;;  %s2417_s8 = inlined_call_operand.vmem [shape: f32[2,1,32], index: 8, kind: input, shape index: {}]   ;;  %s2418_s9 = inlined_call_operand.vmem [shape: f32[2,1,32], index: 9, kind: input, shape index: {}]   ;;  %s2419_s10 = inlined_call_operand.vmem [shape: bf16[2,32,128], index: 10, kind: input, shape index: {}]   ;;  %s2420_s11 = inlined_call_operand.vmem [shape: f32[2,1,128], index: 11, kind: input, shape index: {}]   ;;  %s2421_s12 = inlined_call_operand.vmem [shape: bf16[2,128,32], index: 12, kind: input, shape index: {}]   ;;  %s2422_s13 = inlined_call_operand.vmem [shape: f32[2,1,32], index: 13, kind: input, shape index: {}]   ;;  %s2423_s14 = inlined_call_operand.hbm [shape: f32[2,8,32], index: 14, kind: output, shape index: {}]  }
   0x1   :  { %2440 = sst [smem:[#allocation19_spill]] %s2409_s0 }
   0x2   :  { %2441 = sst [smem:[#allocation20_spill]] %s2413_s4 }
   0x3   :  { %2442 = sst [smem:[#allocation21_spill]] %s2415_s6 }
   0x4   :  { %2443 = sst [smem:[#allocation22_spill]] %s2416_s7 }
   0x5   :  { %2444 = sst [smem:[#allocation23_spill]] %s2417_s8 }
   0x6   :  { %2445 = sst [smem:[#allocation24_spill]] %s2420_s11 }
   0x7   :  { %2446 = sst [smem:[#allocation25_spill]] %s2421_s12 }
   0x8   :  { %2447 = sst [smem:[#allocation26_spill]] %s2422_s13 }
   0x9   :  { %2448 = sst [smem:[#allocation27_spill]] %s2423_s14 }
   0xa   :  { %19 = vsyncpa [#allocation3], 0 }
   0xb   :  { %21 = vsyncpa [#allocation3 + $0x1], 0  ;;  %s2080_s29 = smov 0   ;;  %s2082_s30 = smov 0  }
   0xc   :  { %s2084_s15 = smov 0   ;;  %s2086_s16 = smov 0  }
   0xd   :  { %s2088_s17 = smov 0   ;;  %s2090_s18 = smov 0  }
   0xe   :  { %s2092_s19 = smov 0   ;;  %s2094_s20 = smov 0  }
   0xf LB: > { %2449 = sst [smem:[#allocation5_spill]] %s1966_s29  ;;  %s1645_s21 = sadd.s32 4294967295, %s1994_s20   ;;  %s1994_s20 = sphi %s2094_s20, %s27_s20   ;;  %s1990_s19 = sphi %s2092_s19, %s2499_s19   ;;  %s1986_s18 = sphi %s2090_s18, %s2498_s18   ;;  %s1982_s17 = sphi %s2088_s17, %s2497_s17   ;;  %s1978_s16 = sphi %s2086_s16, %s2496_s16   ;;  %s1974_s15 = sphi %s2084_s15, %s2495_s15   ;;  %s1970_s30 = sphi %s2082_s30, %s2494_s30   ;;  %s1966_s29 = sphi %s2080_s29, %s2493_s29  }
  0x10   : > { %2450 = sst [smem:[#allocation6_spill]] %s1970_s30  ;;  %s1646_s22 = sadd.s32 4294967294, %s1994_s20  }
  0x11   : > { %2451 = sst [smem:[#allocation7_spill]] %s1974_s15  ;;  %s36_s23 = sadd.s32 1, %s1986_s18 }
  0x12   : > { %2452 = sst [smem:[#allocation8_spill]] %s1978_s16  ;;  %p37_p0 = scmp.ge.s32.totalorder %s36_s23, 2 }
  0x13   : > { %2453 = sst [smem:[#allocation9_spill]] %s1982_s17  ;;  %s39_s24 = sadd.s32 1, %s1990_s19 }
  0x14   : > { %2454 = sst [smem:[#allocation10_spill]] %s1986_s18  ;;  %p420_p1 = scmp.ne.s32.totalorder %s1974_s15, %s1970_s30 }
  0x15   : > { %2455 = sst [smem:[#allocation11_spill]] %s1990_s19  ;;  %p421_p2 = scmp.eq.s32.totalorder %s1645_s21, 3 }
  0x16   : > { %2456 = sst [smem:[#allocation12_spill]] %s1994_s20  ;;  %s2501_s23 = smov (%p37_p0, %s36_s23), 0 }
  0x17   : > { %2457 = sst [smem:[#allocation13_spill]] %s2501_s23  ;;  %s2503_s24 = smov (!%p37_p0, %s39_s24), %s1990_s19 }
  0x18   : > { %p2129_p3 = por %p421_p2, %p420_p1  ;;  %p426_p4 = scmp.ne.s32.totalorder %s1970_s30, %s1966_s29 }
  0x19   : > { %p41_p5 = scmp.ge.s32.totalorder %s2503_s24, 2  ;;  %p427_p6 = scmp.eq.s32.totalorder %s1646_s22, 3 }
  0x1a   : > { %s2458_s25 = scalar_select %p2129_p3, 1, 0 }
  0x1b   : > { %p1649_p7 = scmp.ge.s32.totalorder %s1994_s20, 1  ;;  %p538_p8 = scmp.lt.s32.totalorder %s1994_s20, 5 }
  0x1c   : > { %2459 = sst [smem:[#allocation14_spill]] %s2458_s25  ;;  %s2505_s24 = smov (%p41_p5, %s2503_s24), 0 }
  0x1d   : > { %2460 = sst [smem:[#allocation15_spill]] %s2505_s24  ;;  %p2139_p9 = por %p427_p6, %p426_p4 }
  0x1e   : > { %p539_p10 = pnand %p1649_p7, %p538_p8  ;;  %s407_s27 = ssub.s32 %s1990_s19, %s2505_s24 }
  0x1f   : > { %s2461_s26 = scalar_select %p2139_p9, 1, 0 }
  0x20   : > { %s410_s28 = sadd.s32 1, %s1974_s15  ;;  %p408_p11 = scmp.eq.s32.totalorder %s407_s27, 0 }
  0x21   : > { %2462 = sst [smem:[#allocation16_spill]] %s2461_s26  ;;  %542 = sbr.rel (%p539_p10) target bundleno = 3002 (0xbba), region = 76 }
  0x22   : > { %s2147_s21 = scalar_select %p408_p11, %s1974_s15, %s410_s28  }
  0x24   : > { %2463 = sst [smem:[#allocation17_spill]] %s2147_s21 }
  0x26   : > { %s2426_s22 = sand.u32 1, %s1970_s30   ;;  %p630_p12 = scmp.lt.s32.totalorder %s1982_s17, 1 }
  0x27   : > { %s1650_s23 = sshll.u32 %s2426_s22, 3  ;;  %p637_p13 = scmp.lt.s32.totalorder %s1978_s16, 1 }
  0x28   : > { %s2155_s18 = scalar_select %p630_p12, %s1982_s17, 1 }
  0x29   : > { %s2158_s24 = scalar_select %p637_p13, %s1978_s16, 1 }
  0x2a   : > { %s1651_s27 = sshll.u32 %s2155_s18, 3  ;;  %s2464_s0 = sld [smem:[#allocation19_spill]] }
  0x2b   : > { %s1697_s16 = sshll.u32 %s2158_s24, 4  ;;  %s2465_s4 = sld [smem:[#allocation20_spill]] }
  0x2c   : > { %s2466_s6 = sld [smem:[#allocation21_spill]]  ;;  %s2206_s28 = scalar_lea.vmem %s2419_s10, %s1697_s16 }
  0x2d   : > { %s2470_s19 = sld [smem:[#allocation24_spill]]  ;;  %s2222_s12 = scalar_lea.vmem [#allocation2], %s1650_s23 }
  0x2e   : > { %s2471_s30 = sld [smem:[#allocation26_spill]] }
  0x2f   : > { %s2472_s14 = sld [smem:[#allocation25_spill]] }
  0x30   : > { %s633_s26 = scalar_lea.vmem %s2464_s0, %s1651_s27  ;;  %s664_s0 = scalar_lea.vmem %s2418_s9, %s2158_s24 }
  0x31   : > { %s2180_s11 = scalar_lea.vmem %s2465_s4, %s1697_s16  ;;  %s2473_s13 = sld [smem:[#allocation8_spill]] }
  0x32   : > { %s2189_s27 = scalar_lea.vmem %s2466_s6, %s1697_s16 }
  0x33   : > { %2467 = sst [smem:[#allocation18_spill]] %s2189_s27  ;;  %s672_s6 = scalar_lea.vmem %s2470_s19, %s2158_s24 }
  0x34   : > { %s1700_s27 = sshll.u32 %s2158_s24, 6  ;;  %s680_s7 = scalar_lea.vmem %s2471_s30, %s2158_s24 }
  0x35   : > { %s2220_s8 = scalar_lea.vmem %s2472_s14, %s1700_s27 }
  0x37   : > { %p1660_p0 = scmp.ne.s32.totalorder %s2473_s13, 0 }
  0x39   : > { %685 = sbr.rel (%p1660_p0) target bundleno = 64 (0x40), region = 80 }
  0x3e   : > { %v686_v0 = vld [vmem:[%s633_s26] sm:$0xff]  ;;  %vm687_vm0 = vcmask 261120  }
  0x3f   : > { %688 = vst.msk [vmem:[%s2222_s12] sm:$0xff] %vm687_vm0, %v686_v0 }
  0x40 PF: > { %vm692_vm1 = vcmask 261120   ;;  %v1870_v8 = vld [vmem:[%s2180_s11 + $0x8] sm:$0xff]   ;;  %v1996_v9 = vmov 0.0   ;;  %vm1997_vm2 = vmmov 0   ;;  %v1871_v10 = vld [vmem:[%s2180_s11] sm:$0xff]   ;;  %s2474_s14 = scalar_lea.vmem %s2411_s2, %s2158_s24  ;;  %s2475_s23 = scalar_lea.vmem %s2412_s3, %s2158_s24  ;;  %vm804_vm5 = vcmask 130048  }
  0x41   : > { %1727 = vmatprep.subr.bf16.mxu0 %v1996_v9  ;;  %1731 = vmatprep.mubr.msk.bf16.mxu0 %vm1997_vm2, %v1996_v9  ;;  %v1661_v20 = vld [vmem:[%s2474_s14] ss:$0 sm:$0xff]  ;;  %s2476_s30 = scalar_lea.vmem %s2414_s5, %s2158_s24  ;;  %s1998_s22 = smov 64   ;;  %vm879_vm6 = vcmask 64512  }
  0x42   : > { %1728 = vmatpush3.bf16.msra.mxu0 %v1870_v8  ;;  %1740 = vmatprep.subr.mxu1 %v1996_v9  ;;  %v1662_v22 = vld [vmem:[%s2475_s23] ss:$0 sm:$0xff]  ;;  %s1999_s15 = smov 96   ;;  %s2477_s20 = scalar_lea.vmem %s2410_s1, %s2155_s18 }
  0x43   : > { %1729 = vmatprep.subr.bf16.mxu0 %v1996_v9  ;;  %1742 = vmatprep.mubr.msk.f32.mxu1 %vm1997_vm2, %v1996_v9  ;;  %v1663_v26 = vld [vmem:[%s2476_s30] ss:$0 sm:$0xff]  ;;  %s2000_s17 = smov 80   ;;  %s2001_s25 = smov 112  }
  0x44   : > { %v1667_v34 = vld [vmem:[%s2477_s20] ss:$0 sm:$0xff]  ;;  %s2002_s18 = smov 48   ;;  %s2478_s13 = sld [smem:[#allocation18_spill]] }
  0x45   : > { %s2003_s4 = smov 16   ;;  %s2479_s16 = sld [smem:[#allocation22_spill]] }
  0x46   : > { %v2227_v1 = vld [vmem:[%s2222_s12] sm:$0xff]  ;;  %1730 = vmatpush3.bf16.msra.mxu0 %v1871_v10  ;;  %s2481_s26 = sld [smem:[#allocation23_spill]] }
  0x47   : > { %v693_v2 = vsel %vm692_vm1, %v2227_v1, 0.0  ;;  %1735 = vmatprep.subr.mxu0 %v1996_v9  ;;  %s2484_s29 = sld [smem:[#allocation9_spill]] }
  0x48   : > { %694 = vadd.xlane.f32.xlu0 %v693_v2  ;;  %s2488_s14 = sld [smem:[#allocation27_spill]] }
  0x4a   : > { %v1872_v0 = vld [vmem:[%s2478_s13 + $0x8] sm:$0xff]   ;;  %v1873_v2 = vld [vmem:[%s2478_s13] sm:$0xff]   ;;  %s1446_s13 = sshll.u32 %s2222_s12, 4  ;;  %s2355_s13 = int_to_ptr.vmem [resolvable:$true] %s1446_s13 }
  0x4b   : > { %s2480_s19 = scalar_lea.vmem %s2479_s16, %s2158_s24 }
  0x4c   : > { %v1674_v8 = vld [vmem:[%s2480_s19] ss:$0 sm:$0xff]  ;;  %s2482_s27 = scalar_lea.vmem %s2481_s26, %s2158_s24  ;;  %s1902_s19 = scalar_lea.vmem %s2355_s13, 128 }
  0x4d   : > { %p1903_p1 = scmp.ne.s32.totalorder %s2355_s13, %s1902_s19 }
  0x4f   : > { %p1904_p2 = pnand %p1903_p1, %p2129_p3 }
  0x51   : > { %p1905_p4 = pneg %p1904_p2 }
  0xd1   : > { %v695_v3 = vpop.xlane.xlu0 %694 }
  0xd2   : > { %v696_v4 = vmul.f32 0.03125, %v695_v3 }
  0xd4   : > { %v697_v5 = vsub.f32 %v2227_v1, %v696_v4 }
  0xd6   : > { %v698_v6 = vmul.f32 %v697_v5, %v697_v5 }
  0xd8   : > { %v699_v7 = vsel %vm692_vm1, %v698_v6, 0.0 }
  0xd9   : > { %700 = vadd.xlane.f32.xlu0 %v699_v7 }
 0x162   : > { %v701_v11 = vpop.xlane.xlu0 %700 }
 0x163   : > { %v702_v12 = vmul.f32 0.032258064, %v701_v11 }
 0x165   : > { %1884 = vrsqrt.f32 %v702_v12  ;;  %vm705_vm3 = vcmp.eq.f32.partialorder %v702_v12, inf  ;;  %v708_v15 = vand.u32 2147483648, %v702_v12  ;;  %vm707_vm4 = vcmp.eq.f32.partialorder %v702_v12, 0.0 }
 0x172   : > { %v1885_v13 = vpop.eup %1884 }
 0x173   : > { %v704_v14 = vmul.f32 %v1885_v13, %v702_v12 }
 0x175   : > { %v706_v16 = vsel %vm705_vm3, %v702_v12, %v704_v14 }
 0x176   : > { %v709_v17 = vsel %vm707_vm4, %v708_v15, %v706_v16 }
 0x177   : > { %v710_v18 = vadd.f32 1e-06, %v709_v17 }
 0x179   : > { %1886 = vrcp.f32 %v710_v18 }
 0x186   : > { %v1887_v19 = vpop.eup %1886 }
 0x187   : > { %v712_v21 = vmul.f32 %v1887_v19, %v697_v5 }
 0x189   : > { %v719_v23 = vmul.f32 %v1661_v20, %v712_v21 }
 0x18b   : > { %v726_v24 = vadd.f32 %v1662_v22, %v719_v23  ;;  %v1874_v22 = vld [vmem:[%s2206_s28 + $0x8] sm:$0xff]   ;;  %v1875_v23 = vld [vmem:[%s2206_s28] sm:$0xff]   ;;  %s2004_s28 = smov [#allocation2]  }
 0x18c   : > { %s1906_s23 = sshll.u32 %s2004_s28, 4  ;;  %s1907_s23 = int_to_ptr.vmem [resolvable:$false] %s1906_s23 }
 0x18d   : > { %v727_v25 = vpack.c.bf16 %v726_v24, %v726_v24  ;;  %s1908_s26 = scalar_lea.vmem %s1907_s23, 256  ;;  %p1909_p5 = scmp.lt.s32.totalorder %s2355_s13, %s1907_s23 }
 0x18e   : > { %p1910_p6 = scmp.lt.s32.totalorder %s1908_s26, %s1902_s19 }
 0x18f   : > { %1732 = vmatmul.mubr.msk.bf16.vlgmr.msra.gmra.mxu0 %vm692_vm1, %v727_v25 }
 0x190   : > { %1737 = vmatprep.mubr.msk.f32.mxu0 %vm1997_vm2, %v1996_v9  ;;  %p1911_p7 = por %p1910_p6, %p1909_p5 }
 0x192   : > { %p1912_p8 = pnand %p1911_p7, %p1905_p4 }
 0x24f   : > { %v788_v27 = vpop.f32.mrf.mxu0 }
 0x250   : > { %v789_v28 = vadd.f32 %v1663_v26, %v788_v27 }
 0x251   : > { %v1733_v29 = vpop.f32.mrf.mxu0 }
 0x252   : > { %891 = vrot.lane.b32.xlu0 %v789_v28, %s1998_s22  ;;  %802 = vrot.lane.b32.xlu1 %v789_v28, %s1999_s15 }
 0x253   : > { %v791_v30 = vpop.f32.mrf.mxu0 }
 0x255   : > { %v1734_v31 = vpop.f32.mrf.mxu0 }
 0x2c4   : > { %v892_v32 = vpop.permute.xlu0 %891  ;;  %v803_v33 = vpop.permute.xlu1 %802 }
 0x2c5   : > { %1736 = vmatpush3.xpose.msk.msra.mxu0 %vm804_vm5, %v803_v33  ;;  %1741 = vmatpush3.msra.mxu1 %v892_v32  ;;  %v1678_v32 = vld [vmem:[%s2482_s27] ss:$0 sm:$0xff] }
 0x2c6   : > { %1745 = vmatprep.subr.mxu1 %v1996_v9  ;;  %1750 = vmatprep.subr.mxu0 %v1996_v9 }
 0x2c8   : > { %1738 = vmatmul.mubr.msk.f32.vlgmr.msra.gmra.mxu0 %vm804_vm5, %v789_v28 }
 0x2c9   : > { %1752 = vmatprep.mubr.msk.f32.mxu0 %vm1997_vm2, %v1996_v9 }
 0x388   : > { %v875_v35 = vpop.f32.mrf.mxu0 }
 0x389   : > { %v876_v36 = vadd.f32 %v1667_v34, %v875_v35 }
 0x38a   : > { %v1739_v37 = vpop.f32.mrf.mxu0 }
 0x38b   : > { %v880_v38 = vsel %vm879_vm6, %v876_v36, -inf }
 0x38c   : > { %881 = vmax.xlane.f32.xlu1 %v880_v38  ;;  %v1876_v38 = vld [vmem:[%s2220_s8 + $0x38] sm:$0xff]  }
 0x415   : > { %v882_v39 = vpop.xlane.xlu1 %881 }
 0x416   : > { %v883_v40 = vsub.f32 %v876_v36, %v882_v39  ;;  %v1877_v39 = vld [vmem:[%s2220_s8 + $0x30] sm:$0xff]  }
 0x418   : > { %v884_v41 = vmul.f32 1.442695, %v883_v40  ;;  %v1878_v40 = vld [vmem:[%s2220_s8 + $0x28] sm:$0xff]  }
 0x41a   : > { %1888 = vpow2.f32 %v884_v41  ;;  %v1879_v41 = vld [vmem:[%s2220_s8 + $0x20] sm:$0xff]  }
 0x427   : > { %v1889_v42 = vpop.eup %1888 }
 0x428   : > { %v886_v43 = vsel %vm879_vm6, %v1889_v42, 0.0 }
 0x429   : > { %887 = vadd.xlane.f32.xlu0 %v886_v43  ;;  %v1881_v43 = vld [vmem:[%s2220_s8 + $0x10] sm:$0xff]  }
 0x43f   : > { %969 = vrot.lane.b32.xlu0 %v789_v28, %s2000_s17 }
 0x443   : > { %967 = vrot.lane.b32.xlu0 %v789_v28, %s2001_s25 }
 0x4b2   : > { %v888_v44 = vpop.xlane.xlu0 %887 }
 0x4b3   : > { %1890 = vrcp.f32 %v888_v44  ;;  %v1882_v44 = vld [vmem:[%s2220_s8 + $0x8] sm:$0xff]  }
 0x4b6   : > { %v970_v46 = vpop.permute.xlu0 %969 }
 0x4ba   : > { %v968_v48 = vpop.permute.xlu0 %967 }
 0x4c0   : > { %v1891_v45 = vpop.eup %1890 }
 0x4c1   : > { %v890_v47 = vmul.f32 %v1891_v45, %v1889_v42  ;;  %v1880_v42 = vld [vmem:[%s2220_s8 + $0x18] sm:$0xff]   ;;  %v1883_v45 = vld [vmem:[%s2220_s8] sm:$0xff]   ;;  %s2485_s8 = sld [smem:[#allocation6_spill]] }
 0x4c3   : > { %1743 = vmatmul.mubr.msk.f32.vlgmr.msra.gmra.mxu1 %vm879_vm6, %v890_v47 }
 0x4c4   : > { %1746 = vmatpush3.xpose.msk.msra.mxu1 %vm804_vm5, %v970_v46  ;;  %1747 = vmatprep.mubr.msk.f32.mxu1 %vm1997_vm2, %v1996_v9  ;;  %v1680_v46 = vld [vmem:[%s672_s6] ss:$0 sm:$0xff] }
 0x4c5   : > { %1771 = vmatprep.subr.bf16.mxu1 %v1996_v9 }
 0x4c7   : > { %1748 = vmatmul.mubr.msk.f32.vlgmr.msra.gmra.mxu1 %vm804_vm5, %v968_v48 }
 0x4c8   : > { %1787 = vmatprep.mubr.msk.bf16.mxu1 %vm1997_vm2, %v1996_v9  ;;  %1772 = vmatpush3.bf16.msra.mxu1 %v1876_v38 }
 0x4c9   : > { %1773 = vmatprep.subr.bf16.mxu1 %v1996_v9 }
 0x4cc   : > { %1774 = vmatpush3.bf16.msra.mxu1 %v1877_v39 }
 0x4cd   : > { %1775 = vmatprep.subr.bf16.mxu1 %v1996_v9 }
 0x4d0   : > { %1776 = vmatpush3.bf16.msra.mxu1 %v1878_v40 }
 0x4d1   : > { %1777 = vmatprep.subr.bf16.mxu1 %v1996_v9 }
 0x4d4   : > { %1778 = vmatpush3.bf16.msra.mxu1 %v1879_v41 }
 0x4d5   : > { %1779 = vmatprep.subr.bf16.mxu1 %v1996_v9 }
 0x4d8   : > { %1780 = vmatpush3.bf16.msra.mxu1 %v1880_v42 }
 0x4d9   : > { %1781 = vmatprep.subr.bf16.mxu1 %v1996_v9 }
 0x4dc   : > { %1782 = vmatpush3.bf16.msra.mxu1 %v1881_v43 }
 0x4dd   : > { %1783 = vmatprep.subr.bf16.mxu1 %v1996_v9 }
 0x4e0   : > { %1784 = vmatpush3.bf16.msra.mxu1 %v1882_v44 }
 0x4e1   : > { %1785 = vmatprep.subr.bf16.mxu1 %v1996_v9 }
 0x4e4   : > { %1786 = vmatpush3.bf16.msra.mxu1 %v1883_v45 }
 0x583   : > { %v963_v49 = vpop.f32.mrf.mxu1 }
 0x585   : > { %v1744_v50 = vpop.f32.mrf.mxu1 }
 0x587   : > { %v1041_v51 = vpop.f32.mrf.mxu1 }
 0x588   : > { %v1042_v52 = vadd.f32 %v1667_v34, %v1041_v51  ;;  %v1679_v34 = vld [vmem:[%s664_s0] ss:$0 sm:$0xff] }
 0x589   : > { %v1749_v53 = vpop.f32.mrf.mxu1 }
 0x58a   : > { %v1045_v54 = vsel %vm879_vm6, %v1042_v52, -inf }
 0x58b   : > { %1046 = vmax.xlane.f32.xlu1 %v1045_v54 }
 0x59c   : > { %1056 = vrot.lane.b32.xlu1 %v789_v28, %s2002_s18  ;;  %s1694_s18 = sshll.u32 %s2484_s29, 7 }
 0x59d   : > { %s2353_s16 = scalar_lea.hbm %s2488_s14, %s1694_s18 }
 0x614   : > { %v1047_v55 = vpop.xlane.xlu1 %1046 }
 0x615   : > { %v1048_v56 = vsub.f32 %v1042_v52, %v1047_v55 }
 0x617   : > { %v1049_v57 = vmul.f32 1.442695, %v1048_v56 }
 0x618   : > { %v1057_v58 = vpop.permute.xlu1 %1056 }
 0x619   : > { %1892 = vpow2.f32 %v1049_v57  ;;  %1751 = vmatpush3.msra.mxu0 %v1057_v58 }
 0x61a   : > { %1755 = vmatprep.subr.bf16.mxu0 %v1996_v9 }
 0x626   : > { %v1893_v59 = vpop.eup %1892 }
 0x627   : > { %v1051_v60 = vsel %vm879_vm6, %v1893_v59, 0.0 }
 0x628   : > { %1052 = vadd.xlane.f32.xlu0 %v1051_v60 }
 0x6b1   : > { %v1053_v61 = vpop.xlane.xlu0 %1052 }
 0x6b2   : > { %1894 = vrcp.f32 %v1053_v61 }
 0x6bf   : > { %v1895_v62 = vpop.eup %1894 }
 0x6c0   : > { %v1055_v63 = vmul.f32 %v1895_v62, %v1893_v59  ;;  %v1692_v62 = vld [vmem:[%s680_s7] ss:$0 sm:$0xff]  ;;  %s2489_s7 = sand.u32 1, %s2485_s8  }
 0x6c1   : > { %s1433_s24 = scalar_lea.sflag [#allocation3], %s2489_s7 }
 0x6c2   : > { %1753 = vmatmul.mubr.msk.f32.vlgmr.msra.gmra.mxu0 %vm879_vm6, %v1055_v63 }
 0x6c3   : > { %1759 = vmatprep.mubr.msk.bf16.mxu0 %vm1997_vm2, %v1996_v9  ;;  %1756 = vmatpush3.bf16.msra.mxu0 %v1872_v0 }
 0x6c4   : > { %1757 = vmatprep.subr.bf16.mxu0 %v1996_v9 }
 0x6c7   : > { %1758 = vmatpush3.bf16.msra.mxu0 %v1873_v2 }
 0x6c8   : > { %1763 = vmatprep.subr.bf16.mxu0 %v1996_v9 }
 0x782   : > { %v1128_v3 = vpop.f32.mrf.mxu0 }
 0x783   : > { %1133 = vrot.lane.b32.xlu1 %v1128_v3, %s2003_s4 }
 0x784   : > { %v1754_v4 = vpop.f32.mrf.mxu0 }
 0x7f5   : > { %v1134_v5 = vpop.permute.xlu1 %1133 }
 0x7f6   : > { %v1136_v6 = vsel %vm804_vm5, %v963_v49, %v1134_v5 }
 0x7f7   : > { %v1137_v7 = vpack.c.bf16 %v1136_v6, %v1136_v6 }
 0x7f9   : > { %1760 = vmatmul.mubr.msk.bf16.vlgmr.msra.gmra.mxu0 %vm692_vm1, %v1137_v7 }
 0x7fa   : > { %1767 = vmatprep.mubr.msk.bf16.mxu0 %vm1997_vm2, %v1996_v9  ;;  %1764 = vmatpush3.bf16.msra.mxu0 %v1874_v22 }
 0x7fb   : > { %1765 = vmatprep.subr.bf16.mxu0 %v1996_v9 }
 0x7fe   : > { %1766 = vmatpush3.bf16.msra.mxu0 %v1875_v23 }
 0x8b9   : > { %v1198_v10 = vpop.f32.mrf.mxu0 }
 0x8ba   : > { %v1199_v11 = vadd.f32 %v1674_v8, %v1198_v10 }
 0x8bb   : > { %v1761_v12 = vpop.f32.mrf.mxu0 }
 0x8bc   : > { %v2302_v13 = vadd.f32 %v1199_v11, %v2227_v1 }
 0x8bd   : > { %v1201_v14 = vpop.f32.mrf.mxu0 }
 0x8be   : > { %v1207_v15 = vsel %vm692_vm1, %v2302_v13, 0.0 }
 0x8bf   : > { %1208 = vadd.xlane.f32.xlu1 %v1207_v15  ;;  %v1762_v16 = vpop.f32.mrf.mxu0 }
 0x948   : > { %v1209_v17 = vpop.xlane.xlu1 %1208 }
 0x949   : > { %v1210_v18 = vmul.f32 0.03125, %v1209_v17 }
 0x94b   : > { %v1211_v19 = vsub.f32 %v2302_v13, %v1210_v18 }
 0x94d   : > { %v1212_v20 = vmul.f32 %v1211_v19, %v1211_v19 }
 0x94f   : > { %v1213_v21 = vsel %vm692_vm1, %v1212_v20, 0.0 }
 0x950   : > { %1214 = vadd.xlane.f32.xlu0 %v1213_v21 }
 0x9d9   : > { %v1215_v1 = vpop.xlane.xlu0 %1214 }
 0x9da   : > { %v1216_v24 = vmul.f32 0.032258064, %v1215_v1 }
 0x9dc   : > { %1896 = vrsqrt.f32 %v1216_v24  ;;  %vm1219_vm7 = vcmp.eq.f32.partialorder %v1216_v24, inf  ;;  %v1222_v27 = vand.u32 2147483648, %v1216_v24  ;;  %vm1221_vm8 = vcmp.eq.f32.partialorder %v1216_v24, 0.0 }
 0x9e9   : > { %v1897_v25 = vpop.eup %1896 }
 0x9ea   : > { %v1218_v26 = vmul.f32 %v1897_v25, %v1216_v24 }
 0x9ec   : > { %v1220_v28 = vsel %vm1219_vm7, %v1216_v24, %v1218_v26 }
 0x9ed   : > { %v1223_v29 = vsel %vm1221_vm8, %v1222_v27, %v1220_v28 }
 0x9ee   : > { %v1224_v30 = vadd.f32 1e-06, %v1223_v29 }
 0x9f0   : > { %1898 = vrcp.f32 %v1224_v30 }
 0x9fd   : > { %v1899_v31 = vpop.eup %1898 }
 0x9fe   : > { %v1226_v33 = vmul.f32 %v1899_v31, %v1211_v19 }
 0xa00   : > { %v1233_v35 = vmul.f32 %v1678_v32, %v1226_v33 }
 0xa02   : > { %v1240_v36 = vadd.f32 %v1679_v34, %v1233_v35 }
 0xa04   : > { %v1241_v37 = vpack.c.bf16 %v1240_v36, %v1240_v36 }
 0xa06   : > { %1768 = vmatmul.mubr.msk.bf16.vlgmr.msra.gmra.mxu0 %vm692_vm1, %v1241_v37 }
 0xac6   : > { %v1302_v47 = vpop.f32.mrf.mxu0 }
 0xac7   : > { %v1303_v48 = vadd.f32 %v1680_v46, %v1302_v47 }
 0xac8   : > { %v1769_v49 = vpop.f32.mrf.mxu0 }
 0xac9   : > { %v1309_v50 = vmul.f32 0.044715, %v1303_v48  ;;  %v1308_v57 = vmul.f32 0.5, %v1303_v48 }
 0xaca   : > { %v1305_v51 = vpop.f32.mrf.mxu0 }
 0xacb   : > { %v1310_v52 = vmul.f32 %v1309_v50, %v1303_v48 }
 0xacc   : > { %v1770_v53 = vpop.f32.mrf.mxu0 }
 0xacd   : > { %v1311_v54 = vmul.f32 %v1310_v52, %v1303_v48 }
 0xacf   : > { %v1312_v55 = vadd.f32 %v1311_v54, %v1303_v48 }
 0xad1   : > { %v1313_v56 = vmul.f32 0.7978846, %v1312_v55 }
 0xad3   : > { %1900 = vtanh.f32 %v1313_v56 }
 0xae0   : > { %v1901_v9 = vpop.eup %1900 }
 0xae1   : > { %v1315_v58 = vadd.f32 1.0, %v1901_v9 }
 0xae3   : > { %v1316_v59 = vmul.f32 %v1315_v58, %v1308_v57 }
 0xae5   : > { %v1317_v60 = vpack.c.bf16 %v1316_v59, %v1316_v59 }
 0xae7   : > { %1788 = vmatmul.mubr.bf16.vlgmr.msra.gmra.mxu1 %v1317_v60 }
 0xba7   : > { %v1416_v61 = vpop.f32.mrf.mxu1 }
 0xba8   : > { %v1422_v63 = vadd.f32 %v1416_v61, %v2302_v13 }
 0xba9   : > { %v1789_v0 = vpop.f32.mrf.mxu1 }
 0xbaa   : > { %v1430_v2 = vadd.f32 %v1692_v62, %v1422_v63 }
 0xbab   : > { %v1419_v3 = vpop.f32.mrf.mxu1 }
 0xbac   : > { %1431 = vst.msk [vmem:[%s2222_s12] sm:$0xff] %vm692_vm1, %v1430_v2 }
 0xbad   : > { %v1790_v4 = vpop.f32.mrf.mxu1 }
 0xbae   : > { %1915 = shalt.err (!%p1912_p8)
}
 0xbaf   : > { %s1916_s12 = scalar_lea.hbm %s2353_s16, 128  ;;  %s1920_s22 = scalar_lea.hbm %s2488_s14, 256 }
 0xbb0   : > { %p1917_p10 = scmp.ne.s32.totalorder %s2353_s16, %s1916_s12  ;;  %p1921_p13 = scmp.lt.s32.totalorder %s2353_s16, %s2488_s14 }
 0xbb1   : > { %p1922_p0 = scmp.lt.s32.totalorder %s1920_s22, %s1916_s12 }
 0xbb2   : > { %p1918_p11 = pnand %p1917_p10, %p2129_p3 }
 0xbb3   : > { %p1923_p1 = por %p1922_p0, %p1921_p13 }
 0xbb4   : > { %p1919_p12 = pneg %p1918_p11 }
 0xbb6   : > { %p1924_p2 = pnand %p1923_p1, %p1919_p12 }
 0xbb8   : > { %1927 = shalt.err (!%p1924_p2)
}
 0xbb9   : > { %1791 = dma.vmem_to_hbm [thread:$0]  (%p2129_p3), %s2355_s13, 128, %s2353_s16, %s1433_s24  }
 0xbba PF: > { %s2490_s21 = sld [smem:[#allocation12_spill]] }
 0xbbb   : > { %s2491_s29 = sld [smem:[#allocation5_spill]] }
 0xbc0   : > { %p1797_p4 = scmp.ge.s32.totalorder %s2490_s21, 2 }
 0xbc1   : > { %s1458_s20 = sand.u32 1, %s2491_s29  }
 0xbc2   : > { %p1794_p5 = pnand %p1797_p4, %p2139_p9  ;;  %s1459_s17 = scalar_lea.sflag [#allocation3], %s1458_s20 }
 0xbc4   : > { %p1795_p6 = pneg %p1794_p5 }
 0xbc6   : > { %1961 = dma.done.wait (%p1795_p6), %s1459_s17, 128  }
 0xbc7   : > { %1963 = vsyncadd (%p1795_p6), %s1459_s17, 4294967168  ;;  %s27_s20 = sadd.s32 1, %s2490_s21   ;;  %s2493_s29 = sld [smem:[#allocation6_spill]] }
 0xbc8   : > { %p24_p7 = scmp.ge.s32.totalorder %s27_s20, 6   ;;  %s2494_s30 = sld [smem:[#allocation7_spill]] }
 0xbc9   : > { %s2495_s15 = sld [smem:[#allocation17_spill]] }
 0xbca   : > { %s2496_s16 = sld [smem:[#allocation10_spill]]  ;;  %26 = sbr.rel (!%p24_p7) target bundleno = 15 (0xf), region = 154 }
 0xbcb   : > { %s2497_s17 = sld [smem:[#allocation11_spill]] }
 0xbcc   : > { %s2498_s18 = sld [smem:[#allocation13_spill]] }
 0xbcd   : > { %s2499_s19 = sld [smem:[#allocation15_spill]] }
 0xbcf   :  { %1464 = vsyncpa [#allocation3], 1 }
 0xbd0   :  { %1466 = vsyncpa [#allocation3 + $0x1], 1 }

</bundles_post_ra>
